<compile_context>
chip_gen: v7x
topology: tpu7x:2x2x1
jax: 0.10.0
libtpu: 0.0.40
codegen_flags: <defaults>
</compile_context>

<pallas_src>
import jax
import jax.numpy as jnp
from jax.experimental import pallas as pl
from jax.experimental.pallas import tpu as pltpu

D_MODEL = 64
D_FF = 128
DIM_F = D_FF // 2      # 64
PACK = 2               # tokens per 128-lane packed row
ROW = PACK * D_MODEL   # 128 lanes per packed row


def _round_up(x, m):
    return ((x + m - 1) // m) * m


def glu_block_kernel(x_ref, w1_ref, b1_ref, w2_ref, b2_ref, o_ref):
    # x_ref : (TM, 128)  input dtype, two tokens per row
    # w1_ref: (128, 256) compute dtype, block-diag, cols [A_tok1|A_tok2|G_tok1|G_tok2]
    # b1_ref: (1, 256)   f32
    # w2_ref: (128, 128) compute dtype, block-diag
    # b2_ref: (1, 128)   f32
    # o_ref : (TM, 128)  output dtype, two tokens per row
    x = x_ref[...].astype(w1_ref.dtype)           # in-kernel cast (VPU, no extra HBM pass)
    h = jnp.dot(x, w1_ref[...], preferred_element_type=jnp.float32) + b1_ref[...]
    a = h[:, :ROW]                                # value half [tok1|tok2] (vreg-aligned split)
    g = h[:, ROW:]                                # gate  half [tok1|tok2]
    gated = a * jnp.maximum(g, 0.0)               # GLU with ReLU gate; dropout p=0 -> no-op
    out = jnp.dot(gated.astype(w2_ref.dtype), w2_ref[...],
                  preferred_element_type=jnp.float32) + b2_ref[...]
    o_ref[...] = out.astype(o_ref.dtype)


def _pack_params(w1, b1, w2, b2, compute_dtype):
    """Build block-diagonal two-token weights once (tiny, outside the hot path)."""
    cd = jnp.dtype(compute_dtype)
    w1a = w1[:, :DIM_F]                            # value-half (64, 64)
    w1b = w1[:, DIM_F:]                            # gate-half  (64, 64)
    z1 = jnp.zeros((D_MODEL, DIM_F), w1.dtype)
    w1_bd = jnp.concatenate(
        [jnp.concatenate([w1a, z1, w1b, z1], axis=1),   # rows: token-1 features
         jnp.concatenate([z1, w1a, z1, w1b], axis=1)],  # rows: token-2 features
        axis=0)                                         # (128, 256)
    b1a, b1b = b1[:DIM_F], b1[DIM_F:]
    b1_bd = jnp.concatenate([b1a, b1a, b1b, b1b]).reshape(1, 2 * ROW).astype(jnp.float32)
    z2 = jnp.zeros((DIM_F, D_MODEL), w2.dtype)
    w2_bd = jnp.concatenate(
        [jnp.concatenate([w2, z2], axis=1),
         jnp.concatenate([z2, w2], axis=1)], axis=0)    # (128, 128)
    b2_bd = jnp.concatenate([b2, b2]).reshape(1, ROW).astype(jnp.float32)
    return w1_bd.astype(cd), b1_bd, w2_bd.astype(cd), b2_bd


def glu_block(x, w1, b1, w2, b2, *, tm=4096, compute_dtype=jnp.float32):
    """x: (..., 64). w1: (64,128) [= linear1.weight.T], b1: (128,),
    w2: (64,64) [= linear2.weight.T], b2: (64,). Returns x.shape / x.dtype.

    compute_dtype: dtype fed to the MXU (f32 = exact default; bf16 = throughput on
    v5e/v6e/v7x).  The x cast happens inside the kernel; accumulation is always f32.
    """
    orig_shape = x.shape
    n = 1
    for s in orig_shape[:-1]:
        n *= s
    x2 = x.reshape(n, D_MODEL)

    # Pack two tokens per 128-lane row (a free reshape when n is even).
    if n % PACK:
        # TODO(synk): odd token counts need one appended zero row (a copy); even counts are free.
        x2 = jnp.concatenate([x2, jnp.zeros((PACK - n % PACK, D_MODEL), x2.dtype)], axis=0)
    n2 = x2.shape[0] // PACK
    xp = x2.reshape(n2, ROW)

    cd = jnp.dtype(compute_dtype)
    w1_bd, b1_bd, w2_bd, b2_bd = _pack_params(w1, b1, w2, b2, cd)

    # Row tile: multiple of 8, or the whole array when it fits in a single tile.
    tm_eff = _round_up(max(int(tm), 8), 8)
    if n2 <= tm_eff:
        tm_eff = n2                                 # block == full array dim (allowed)
    grid = (pl.cdiv(n2, tm_eff),)                   # ragged last block handled by Pallas

    # VMEM budget: double-buffered x + out tiles plus the (tiny) weights + slack.
    tile_bytes = tm_eff * ROW * (x.dtype.itemsize + x.dtype.itemsize)      # x + out tile
    w_bytes = (ROW * 2 * ROW + ROW * ROW) * cd.itemsize + 3 * ROW * 4      # weights + biases
    vmem_limit = int(min(max(2 * (tile_bytes + w_bytes) + (2 << 20), 16 << 20), 48 << 20))

    flops = 2 * n2 * (ROW * 2 * ROW + ROW * ROW)                           # actual MXU work
    bytes_accessed = n2 * ROW * x.dtype.itemsize * 2 + w_bytes
    cost = pl.CostEstimate(flops=flops, transcendentals=0, bytes_accessed=bytes_accessed)

    out = pl.pallas_call(
        glu_block_kernel,
        out_shape=jax.ShapeDtypeStruct((n2, ROW), x.dtype),
        grid_spec=pltpu.PrefetchScalarGridSpec(
            num_scalar_prefetch=0,
            grid=grid,
            in_specs=[
                pl.BlockSpec((tm_eff, ROW), lambda i: (i, 0)),     # x (packed rows)
                pl.BlockSpec((ROW, 2 * ROW), lambda i: (0, 0)),    # W1_bd
                pl.BlockSpec((1, 2 * ROW), lambda i: (0, 0)),      # b1_bd
                pl.BlockSpec((ROW, ROW), lambda i: (0, 0)),        # W2_bd
                pl.BlockSpec((1, ROW), lambda i: (0, 0)),          # b2_bd
            ],
            out_specs=pl.BlockSpec((tm_eff, ROW), lambda i: (i, 0)),
        ),
        compiler_params=pltpu.CompilerParams(
            dimension_semantics=("parallel",),
            vmem_limit_bytes=vmem_limit),
        cost_estimate=cost,
    )(xp, w1_bd, b1_bd, w2_bd, b2_bd)

    out = out.reshape(n2 * PACK, D_MODEL)
    if n2 * PACK != n:
        out = out[:n]
    return out.reshape(orig_shape)


def _reference(x, w1, b1, w2, b2, compute_dtype=jnp.float32):
    """Mirrors the kernel's numerics (input cast + f32 accumulation)."""
    cd = jnp.dtype(compute_dtype)
    xc = x.astype(cd)
    h = jnp.einsum("...d,df->...f", xc, w1.astype(cd),
                   preferred_element_type=jnp.float32) + b1
    a, g = h[..., :DIM_F], h[..., DIM_F:]
    gated = (a * jnp.maximum(g, 0.0)).astype(cd)
    out = jnp.einsum("...f,fd->...d", gated, w2.astype(cd),
                     preferred_element_type=jnp.float32) + b2
    return out.astype(x.dtype)


if __name__ == "__main__":
    key = jax.random.PRNGKey(0)
    k_x, k_w1, k_b1, k_w2, k_b2, k_x2 = jax.random.split(key, 6)

    # Small shapes consistent with the module: batch=2, seq=8, d_model=64.
    x = jax.random.normal(k_x, (2, 8, D_MODEL), dtype=jnp.float32)

    # Deterministic params; weights stored as (in, out) = PyTorch weight.T.
    w1 = jax.random.normal(k_w1, (D_MODEL, D_FF), dtype=jnp.float32) * (1.0 / jnp.sqrt(D_MODEL))
    b1 = jax.random.normal(k_b1, (D_FF,), dtype=jnp.float32) * 0.02
    w2 = jax.random.normal(k_w2, (DIM_F, D_MODEL), dtype=jnp.float32) * (1.0 / jnp.sqrt(DIM_F))
    b2 = jax.random.normal(k_b2, (D_MODEL,), dtype=jnp.float32) * 0.02

    # --- f32 path (strict accuracy, default) ---
    out = jax.block_until_ready(glu_block(x, w1, b1, w2, b2))
    ref = _reference(x, w1, b1, w2, b2)
    assert out.shape == x.shape and out.dtype == x.dtype
    assert jnp.allclose(out, ref, atol=1e-4, rtol=1e-4), "f32 mismatch vs reference"

    # --- odd token count + ragged last grid block (small tm forces 2 grid steps) ---
    x_odd = jax.random.normal(k_x2, (3, 17, D_MODEL), dtype=jnp.float32)
    out_odd = jax.block_until_ready(glu_block(x_odd, w1, b1, w2, b2, tm=16))
    ref_odd = _reference(x_odd, w1, b1, w2, b2)
    assert jnp.allclose(out_odd, ref_odd, atol=1e-4, rtol=1e-4), "ragged-grid mismatch"

    # --- bf16 MXU inputs (cast in-kernel), f32 accumulation ---
    out_bf16 = jax.block_until_ready(
        glu_block(x, w1, b1, w2, b2, compute_dtype=jnp.bfloat16))
    ref_bf16 = _reference(x, w1, b1, w2, b2, compute_dtype=jnp.bfloat16)
    assert jnp.allclose(out_bf16, ref_bf16, atol=1e-2, rtol=1e-2), "bf16 mismatch"

    print("KERNEL_OK")
</pallas_src>

<mosaic_0001>
module attributes {stable_mosaic.version = 11 : i64} {
  func.func @glu_block_kernel(%arg0: i32, %arg1: memref<8x128xf32, #tpu.memory_space<vmem>>, %arg2: memref<128x256xf32, #tpu.memory_space<vmem>>, %arg3: memref<1x256xf32, #tpu.memory_space<vmem>>, %arg4: memref<128x128xf32, #tpu.memory_space<vmem>>, %arg5: memref<1x128xf32, #tpu.memory_space<vmem>>, %arg6: memref<8x128xf32, #tpu.memory_space<vmem>>) attributes {dimension_semantics = [#tpu.dimension_semantics<parallel>], iteration_bounds = array<i64: 1>, scalar_prefetch = 0 : i64, scratch_operands = 0 : i64, tpu.core_type = #tpu.core_type<tc>, window_params = [{transform_indices = @transform_0, window_bounds = array<i64: 8, 128>}, {pipeline_mode = #tpu.pipeline_mode<synchronous>, transform_indices = @transform_1, window_bounds = array<i64: 128, 256>}, {pipeline_mode = #tpu.pipeline_mode<synchronous>, transform_indices = @transform_2, window_bounds = array<i64: 1, 256>}, {pipeline_mode = #tpu.pipeline_mode<synchronous>, transform_indices = @transform_3, window_bounds = array<i64: 128, 128>}, {pipeline_mode = #tpu.pipeline_mode<synchronous>, transform_indices = @transform_4, window_bounds = array<i64: 1, 128>}, {transform_indices = @transform_5, window_bounds = array<i64: 8, 128>}]} {
    %c0 = arith.constant 0 : index
    %c0_0 = arith.constant 0 : index
    %0 = vector.load %arg1[%c0, %c0_0] : memref<8x128xf32, #tpu.memory_space<vmem>>, vector<8x128xf32>
    %c0_1 = arith.constant 0 : index
    %c0_2 = arith.constant 0 : index
    %1 = vector.load %arg2[%c0_1, %c0_2] : memref<128x256xf32, #tpu.memory_space<vmem>>, vector<128x256xf32>
    %cst = arith.constant dense<0.000000e+00> : vector<8x256xf32>
    %2 = tpu.matmul %0, %1, %cst {dimension_numbers = #tpu.dot_dimension_numbers<[1], [0], [0], [1], [0, 0, 1, 1], [], []>} : vector<8x128xf32>, vector<128x256xf32>, vector<8x256xf32> -> vector<8x256xf32>
    %c0_3 = arith.constant 0 : index
    %c0_4 = arith.constant 0 : index
    %3 = vector.load %arg3[%c0_3, %c0_4] : memref<1x256xf32, #tpu.memory_space<vmem>>, vector<1x256xf32>
    %4 = vector.broadcast %3 : vector<1x256xf32> to vector<8x256xf32>
    %5 = arith.addf %2, %4 : vector<8x256xf32>
    %6 = vector.extract_strided_slice %5 {offsets = [0, 0], sizes = [8, 128], strides = [1, 1]} : vector<8x256xf32> to vector<8x128xf32>
    %7 = vector.extract_strided_slice %5 {offsets = [0, 128], sizes = [8, 128], strides = [1, 1]} : vector<8x256xf32> to vector<8x128xf32>
    %cst_5 = arith.constant 0.000000e+00 : f32
    %8 = vector.broadcast %cst_5 : f32 to vector<8x128xf32>
    %9 = arith.maximumf %7, %8 : vector<8x128xf32>
    %10 = arith.mulf %6, %9 : vector<8x128xf32>
    %c0_6 = arith.constant 0 : index
    %c0_7 = arith.constant 0 : index
    %11 = vector.load %arg4[%c0_6, %c0_7] : memref<128x128xf32, #tpu.memory_space<vmem>>, vector<128x128xf32>
    %cst_8 = arith.constant dense<0.000000e+00> : vector<8x128xf32>
    %12 = tpu.matmul %10, %11, %cst_8 {dimension_numbers = #tpu.dot_dimension_numbers<[1], [0], [0], [1], [0, 0, 1, 1], [], []>} : vector<8x128xf32>, vector<128x128xf32>, vector<8x128xf32> -> vector<8x128xf32>
    %c0_9 = arith.constant 0 : index
    %c0_10 = arith.constant 0 : index
    %13 = vector.load %arg5[%c0_9, %c0_10] : memref<1x128xf32, #tpu.memory_space<vmem>>, vector<1x128xf32>
    %14 = vector.broadcast %13 : vector<1x128xf32> to vector<8x128xf32>
    %15 = arith.addf %12, %14 : vector<8x128xf32>
    %c0_11 = arith.constant 0 : index
    %c0_12 = arith.constant 0 : index
    %16 = vector.load %arg6[%c0_11, %c0_12] : memref<8x128xf32, #tpu.memory_space<vmem>>, vector<8x128xf32>
    tpu.vector_store %arg6[%c0_11, %c0_12], %15 {strides = array<i32>} : memref<8x128xf32, #tpu.memory_space<vmem>>, vector<8x128xf32>,
    return
  }
  func.func @transform_0(%arg0: i32) -> (i32, i32) {
    %c0_i32 = arith.constant 0 : i32
    %c0_i32_0 = arith.constant 0 : i32
    return %arg0, %c0_i32 : i32, i32
  }
  func.func @transform_1(%arg0: i32) -> (i32, i32) {
    %c0_i32 = arith.constant 0 : i32
    %c0_i32_0 = arith.constant 0 : i32
    %c0_i32_1 = arith.constant 0 : i32
    return %c0_i32, %c0_i32_0 : i32, i32
  }
  func.func @transform_2(%arg0: i32) -> (i32, i32) {
    %c0_i32 = arith.constant 0 : i32
    %c0_i32_0 = arith.constant 0 : i32
    %c0_i32_1 = arith.constant 0 : i32
    return %c0_i32, %c0_i32_0 : i32, i32
  }
  func.func @transform_3(%arg0: i32) -> (i32, i32) {
    %c0_i32 = arith.constant 0 : i32
    %c0_i32_0 = arith.constant 0 : i32
    %c0_i32_1 = arith.constant 0 : i32
    return %c0_i32, %c0_i32_0 : i32, i32
  }
  func.func @transform_4(%arg0: i32) -> (i32, i32) {
    %c0_i32 = arith.constant 0 : i32
    %c0_i32_0 = arith.constant 0 : i32
    %c0_i32_1 = arith.constant 0 : i32
    return %c0_i32, %c0_i32_0 : i32, i32
  }
  func.func @transform_5(%arg0: i32) -> (i32, i32) {
    %c0_i32 = arith.constant 0 : i32
    %c0_i32_0 = arith.constant 0 : i32
    return %arg0, %c0_i32 : i32, i32
  }
}

</mosaic_0001>

<bundles_post_ra>
// kernel: tpu_custom_call.1
= control target key start
LH: loop header
LB: loop body
LE: loop exit
PB: predicated region body
PF: predicated region fallthrough
CT: control target
= control target key end

     0   :  { %10 = vsyncpa [#allocation3], 0  ;;  %s607_s0 = inlined_call_operand.hbm [shape: f32[8,128], index: 0, kind: input, shape index: {}]   ;;  %s608_s1 = inlined_call_operand.hbm [shape: f32[128,256], index: 1, kind: input, shape index: {}]   ;;  %s609_s2 = inlined_call_operand.vmem [shape: f32[1,256], index: 2, kind: input, shape index: {}]   ;;  %s610_s3 = inlined_call_operand.hbm [shape: f32[128,128], index: 3, kind: input, shape index: {}]   ;;  %s611_s4 = inlined_call_operand.vmem [shape: f32[1,128], index: 4, kind: input, shape index: {}]   ;;  %s612_s5 = inlined_call_operand.hbm [shape: f32[8,128], index: 5, kind: output, shape index: {}]  }
   0x1   :  { %11 = vsyncpa [#allocation6], 0 }
   0x2   :  { %12 = vsyncpa [#allocation4], 0  ;;  %s502_s18 = smov [#allocation5]   ;;  %s408_s22 = scalar_lea.hbm %s608_s1, 4096 }
   0x3   :  { %s28_s19 = sshll.u32 %s502_s18, 4  ;;  %p409_p0 = scmp.ne.s32.totalorder %s608_s1, %s408_s22  ;;  %s29_s19 = int_to_ptr.vmem [resolvable:$true] %s28_s19 }
   0x4   :  { %p412_p1 = scmp.lt.u32.totalorder %s408_s22, %s608_s1 }
   0x6   :  { %p414_p2 = pnand %p412_p1, %p409_p0 }
   0x8   :  { %417 = shalt.err (!%p414_p2)
}
   0x9   :  { %s418_s27 = scalar_lea.vmem %s29_s19, 4096  ;;  %p423_p4 = scmp.lt.s32.totalorder %s29_s19, %s29_s19 }
   0xa   :  { %p419_p3 = scmp.ne.s32.totalorder %s29_s19, %s418_s27  ;;  %p424_p5 = scmp.lt.s32.totalorder %s418_s27, %s418_s27 }
   0xc   :  { %p425_p6 = por %p424_p5, %p423_p4 }
   0xe   :  { %p426_p7 = pnand %p425_p6, %p419_p3 }
  0x10   :  { %429 = shalt.err (!%p426_p7)
}
  0x11   :  { %s503_s28 = smov 256   ;;  %s504_s29 = smov 16  }
  0x12   :  { %34 = dma.hbm_to_vmem [thread:$0]  %s608_s1, 4096, %s29_s19, [#allocation6], %s503_s28, %s503_s28, %s504_s29  }
  0x13   :  { %s505_s7 = smov [#allocation2]   ;;  %s506_s9 = smov [#allocation7]  }
  0x14   :  { %s19_s8 = sshll.u32 %s505_s7, 4  ;;  %s42_s10 = sshll.u32 %s506_s9, 4  ;;  %s20_s8 = int_to_ptr.vmem [resolvable:$true] %s19_s8  ;;  %s43_s10 = int_to_ptr.vmem [resolvable:$true] %s42_s10 }
  0x15   :  { %s430_s13 = scalar_lea.hbm %s607_s0, 128 }
  0x16   :  { %p431_p8 = scmp.ne.s32.totalorder %s607_s0, %s430_s13  ;;  %p434_p9 = scmp.lt.u32.totalorder %s430_s13, %s607_s0 }
  0x18   :  { %p436_p10 = pnand %p434_p9, %p431_p8 }
  0x1a   :  { %439 = shalt.err (!%p436_p10)
}
  0x1b   :  { %s440_s1 = scalar_lea.vmem %s20_s8, 128  ;;  %p445_p12 = scmp.lt.s32.totalorder %s20_s8, %s20_s8 }
  0x1c   :  { %p441_p11 = scmp.ne.s32.totalorder %s20_s8, %s440_s1  ;;  %p446_p13 = scmp.lt.s32.totalorder %s440_s1, %s440_s1 }
  0x1e   :  { %p447_p0 = por %p446_p13, %p445_p12 }
  0x20   :  { %p448_p1 = pnand %p447_p0, %p441_p11 }
  0x22   :  { %451 = shalt.err (!%p448_p1)
}
  0x23   :  { %22 = dma.hbm_to_vmem [thread:$0]  %s607_s0, 128, %s20_s8, [#allocation3]  }
  0x24   :  { %s452_s22 = scalar_lea.hbm %s610_s3, 2048 }
  0x25   :  { %p453_p2 = scmp.ne.s32.totalorder %s610_s3, %s452_s22  ;;  %p456_p3 = scmp.lt.u32.totalorder %s452_s22, %s610_s3 }
  0x27   :  { %p458_p4 = pnand %p456_p3, %p453_p2 }
  0x29   :  { %461 = shalt.err (!%p458_p4)
}
  0x2a   :  { %s462_s27 = scalar_lea.vmem %s43_s10, 2048  ;;  %p467_p6 = scmp.lt.s32.totalorder %s43_s10, %s43_s10 }
  0x2b   :  { %p463_p5 = scmp.ne.s32.totalorder %s43_s10, %s462_s27  ;;  %p468_p7 = scmp.lt.s32.totalorder %s462_s27, %s462_s27 }
  0x2d   :  { %p469_p8 = por %p468_p7, %p467_p6 }
  0x2f   :  { %p470_p9 = pnand %p469_p8, %p463_p5 }
  0x31   :  { %473 = shalt.err (!%p470_p9)
}
  0x32   :  { %s507_s0 = smov 128   ;;  %s508_s28 = smov 8  }
  0x33   :  { %48 = dma.hbm_to_vmem [thread:$0]  %s610_s3, 2048, %s43_s10, [#allocation6], %s507_s0, %s507_s0, %s508_s28  }
  0x34   :  { %496 = dma.done.wait [#allocation3], 128  }
  0x35   :  { %497 = vsyncadd [#allocation3], 4294967168 }
  0x36   :  { %498 = dma.done.wait [#allocation6], 6144  }
  0x37   :  { %499 = vsyncadd [#allocation6], 4294961152  ;;  %v509_v0 = vmov 0.0   ;;  %v510_v1 = vmov 0.0|0.0   ;;  %v62_v2 = vld [vmem:[#allocation5 + $0x8] sm:$0xff]  ;;  %v64_v3 = vld [vmem:[#allocation5 + $0x18] sm:$0xff] }
  0x38   :  { %169 = vmatprep.mubr.f32.mxu0 %v509_v0  ;;  %373 = vmatprep.subr.bf16.mxu1 %v510_v1  ;;  %v61_v4 = vld [vmem:[#allocation5] sm:$0xff]  ;;  %v341_v5 = vpack.c.bf16 %v64_v3, %v62_v2  ;;  %v63_v6 = vld [vmem:[#allocation5 + $0x10] sm:$0xff]  ;;  %v66_v7 = vld [vmem:[#allocation5 + $0x28] sm:$0xff]  ;;  %vm511_vm0 = vmmov 0   ;;  %s512_s9 = smov [#allocation8]  }
  0x39   :  { %v68_v8 = vld [vmem:[#allocation5 + $0x38] sm:$0xff]  ;;  %v343_v9 = vpack.c.bf16 %v63_v6, %v61_v4  ;;  %v65_v11 = vld [vmem:[#allocation5 + $0x20] sm:$0xff]  ;;  %v67_v12 = vld [vmem:[#allocation5 + $0x30] sm:$0xff]  ;;  %338 = vmatprep.mubr.msk.f32.mxu1 %vm511_vm0, %v509_v0  ;;  %s278_s10 = sshll.u32 %s512_s9, 4  ;;  %s279_s10 = int_to_ptr.vmem [resolvable:$true] %s278_s10 }
  0x3a   :  { %v345_v10 = vpack.c.bf16 %v68_v8, %v66_v7  ;;  %v70_v13 = vld [vmem:[#allocation5 + $0x48] sm:$0xff]  ;;  %342 = vmatprep.subr.bf16.mxu0 %v341_v5  ;;  %v72_v14 = vld [vmem:[#allocation5 + $0x58] sm:$0xff]  ;;  %v347_v15 = vpack.c.bf16 %v67_v12, %v65_v11  ;;  %v69_v17 = vld [vmem:[#allocation5 + $0x40] sm:$0xff]  ;;  %p479_p11 = scmp.lt.s32.totalorder %s279_s10, %s279_s10 }
  0x3b   :  { %344 = vmatpush1.bf16.msra.mxu0 %v343_v9  ;;  %v349_v16 = vpack.c.bf16 %v72_v14, %v70_v13  ;;  %v71_v18 = vld [vmem:[#allocation5 + $0x50] sm:$0xff]  ;;  %v74_v19 = vld [vmem:[#allocation5 + $0x68] sm:$0xff]  ;;  %v76_v20 = vld [vmem:[#allocation5 + $0x78] sm:$0xff]  ;;  %v95_v13 = vlaneseq }
  0x3c   :  { %346 = vmatprep.subr.bf16.mxu0 %v345_v10  ;;  %v351_v21 = vpack.c.bf16 %v71_v18, %v69_v17  ;;  %v353_v22 = vpack.c.bf16 %v76_v20, %v74_v19  ;;  %v73_v23 = vld [vmem:[#allocation5 + $0x60] sm:$0xff]  ;;  %v75_v24 = vld [vmem:[#allocation5 + $0x70] sm:$0xff]  ;;  %v78_v25 = vld [vmem:[#allocation5 + $0x88] sm:$0xff] }
  0x3d   :  { %v80_v26 = vld [vmem:[#allocation5 + $0x98] sm:$0xff]  ;;  %v178_v27 = vld [vmem:[#allocation7] sm:$0xff]  ;;  %v179_v28 = vld [vmem:[#allocation7 + $0x8] sm:$0xff]  ;;  %v355_v30 = vpack.c.bf16 %v75_v24, %v73_v23  ;;  %v96_v14 = vshrl.u32 %v95_v13, 7 }
  0x3e   :  { %v180_v29 = vld [vmem:[#allocation7 + $0x10] sm:$0xff]  ;;  %v374_v31 = vpack.c.bf16 %v179_v28, %v178_v27  ;;  %v181_v32 = vld [vmem:[#allocation7 + $0x18] sm:$0xff]  ;;  %v357_v33 = vpack.c.bf16 %v80_v26, %v78_v25  ;;  %v77_v34 = vld [vmem:[#allocation5 + $0x80] sm:$0xff] }
  0x3f   :  { %348 = vmatpush1.bf16.msra.mxu0 %v347_v15  ;;  %v79_v35 = vld [vmem:[#allocation5 + $0x90] sm:$0xff]  ;;  %v82_v36 = vld [vmem:[#allocation5 + $0xa8] sm:$0xff]  ;;  %v84_v37 = vld [vmem:[#allocation5 + $0xb8] sm:$0xff]  ;;  %v377_v38 = vpack.c.bf16 %v181_v32, %v180_v29  ;;  %v101_v15 = vsub.s32 1, %v96_v14  ;;  %v97_v17 = vsub.s32 0, %v96_v14 }
  0x40   :  { %350 = vmatprep.subr.bf16.mxu0 %v349_v16  ;;  %375 = vmatpush3.bf16.msra.mxu1 %v374_v31  ;;  %v182_v39 = vld [vmem:[#allocation7 + $0x20] sm:$0xff]  ;;  %v183_v40 = vld [vmem:[#allocation7 + $0x28] sm:$0xff]  ;;  %v359_v41 = vpack.c.bf16 %v79_v35, %v77_v34  ;;  %v361_v42 = vpack.c.bf16 %v84_v37, %v82_v36  ;;  %v83_v44 = vld [vmem:[#allocation5 + $0xb0] sm:$0xff] }
  0x41   :  { %376 = vmatprep.subr.bf16.mxu1 %v510_v1  ;;  %v81_v43 = vld [vmem:[#allocation5 + $0xa0] sm:$0xff]  ;;  %v86_v45 = vld [vmem:[#allocation5 + $0xc8] sm:$0xff]  ;;  %v88_v46 = vld [vmem:[#allocation5 + $0xd8] sm:$0xff]  ;;  %v380_v47 = vpack.c.bf16 %v183_v40, %v182_v39 }
  0x42   :  { %v184_v48 = vld [vmem:[#allocation7 + $0x30] sm:$0xff]  ;;  %v185_v49 = vld [vmem:[#allocation7 + $0x38] sm:$0xff]  ;;  %v363_v50 = vpack.c.bf16 %v83_v44, %v81_v43  ;;  %v365_v51 = vpack.c.bf16 %v88_v46, %v86_v45  ;;  %v85_v52 = vld [vmem:[#allocation5 + $0xc0] sm:$0xff] }
  0x43   :  { %352 = vmatpush1.bf16.msra.mxu0 %v351_v21  ;;  %v87_v53 = vld [vmem:[#allocation5 + $0xd0] sm:$0xff]  ;;  %v90_v54 = vld [vmem:[#allocation5 + $0xe8] sm:$0xff]  ;;  %v92_v55 = vld [vmem:[#allocation5 + $0xf8] sm:$0xff]  ;;  %v383_v56 = vpack.c.bf16 %v185_v49, %v184_v48 }
  0x44   :  { %354 = vmatprep.subr.bf16.mxu0 %v353_v22  ;;  %378 = vmatpush3.bf16.msra.mxu1 %v377_v38  ;;  %v186_v57 = vld [vmem:[#allocation7 + $0x40] sm:$0xff]  ;;  %v187_v58 = vld [vmem:[#allocation7 + $0x48] sm:$0xff]  ;;  %v367_v59 = vpack.c.bf16 %v87_v53, %v85_v52  ;;  %v369_v60 = vpack.c.bf16 %v92_v55, %v90_v54  ;;  %v91_v62 = vld [vmem:[#allocation5 + $0xf0] sm:$0xff] }
  0x45   :  { %379 = vmatprep.subr.bf16.mxu1 %v510_v1  ;;  %v89_v61 = vld [vmem:[#allocation5 + $0xe0] sm:$0xff]  ;;  %v386_v63 = vpack.c.bf16 %v187_v58, %v186_v57  ;;  %v188_v2 = vld [vmem:[#allocation7 + $0x50] sm:$0xff]  ;;  %v189_v3 = vld [vmem:[#allocation7 + $0x58] sm:$0xff] }
  0x46   :  { %v371_v4 = vpack.c.bf16 %v91_v62, %v89_v61  ;;  %v389_v5 = vpack.c.bf16 %v189_v3, %v188_v2  ;;  %v60_v6 = vld [vmem:[#allocation2] sm:$0xff]  ;;  %v190_v7 = vld [vmem:[#allocation7 + $0x60] sm:$0xff]  ;;  %v191_v8 = vld [vmem:[#allocation7 + $0x68] sm:$0xff] }
  0x47   :  { %356 = vmatpush1.bf16.msra.mxu0 %v355_v30  ;;  %v392_v9 = vpack.c.bf16 %v191_v8, %v190_v7  ;;  %v192_v10 = vld [vmem:[#allocation7 + $0x70] sm:$0xff]  ;;  %v193_v11 = vld [vmem:[#allocation7 + $0x78] sm:$0xff] }
  0x48   :  { %358 = vmatprep.subr.bf16.mxu0 %v357_v33  ;;  %381 = vmatpush3.bf16.msra.mxu1 %v380_v47  ;;  %v395_v12 = vpack.c.bf16 %v193_v11, %v192_v10  ;;  %v93_v16 = vld [vmem:[%s609_s2] sm:$0x3]  ;;  %s474_s2 = scalar_lea.vmem %s279_s10, 128 }
  0x49   :  { %382 = vmatprep.subr.bf16.mxu1 %v510_v1  ;;  %v102_v18 = vrot.slane %v93_v16, %v101_v15  ;;  %v98_v19 = vrot.slane %v93_v16, %v97_v17  ;;  %v288_v0 = vld [vmem:[%s611_s4] ss:$0 sm:$0xff]  ;;  %p475_p10 = scmp.ne.s32.totalorder %s279_s10, %s474_s2  ;;  %p480_p12 = scmp.lt.s32.totalorder %s474_s2, %s474_s2 }
  0x4b   :  { %360 = vmatpush1.bf16.msra.mxu0 %v359_v41  ;;  %p481_p13 = por %p480_p12, %p479_p11 }
  0x4c   :  { %362 = vmatprep.subr.bf16.mxu0 %v361_v42  ;;  %384 = vmatpush3.bf16.msra.mxu1 %v383_v56 }
  0x4d   :  { %385 = vmatprep.subr.bf16.mxu1 %v510_v1  ;;  %p482_p0 = pnand %p481_p13, %p475_p10 }
  0x4f   :  { %364 = vmatpush1.bf16.msra.mxu0 %v363_v50 }
  0x50   :  { %366 = vmatprep.subr.bf16.mxu0 %v365_v51  ;;  %387 = vmatpush3.bf16.msra.mxu1 %v386_v63 }
  0x51   :  { %388 = vmatprep.subr.bf16.mxu1 %v510_v1 }
  0x53   :  { %368 = vmatpush1.bf16.msra.mxu0 %v367_v59 }
  0x54   :  { %370 = vmatprep.subr.bf16.mxu0 %v369_v60  ;;  %390 = vmatpush3.bf16.msra.mxu1 %v389_v5 }
  0x55   :  { %391 = vmatprep.subr.bf16.mxu1 %v510_v1 }
  0x57   :  { %372 = vmatpush1.bf16.msra.mxu0 %v371_v4 }
  0x58   :  { %393 = vmatpush3.bf16.msra.mxu1 %v392_v9 }
  0x59   :  { %394 = vmatprep.subr.bf16.mxu1 %v510_v1 }
  0x5a   :  { %170 = vmatmul.mubr.f32.vlgmr.msra.gmra.mrb[0].mxu0 %v60_v6 }
  0x5c   :  { %396 = vmatpush3.bf16.msra.mxu1 %v395_v12 }
 0x12d   :  { %v171_v20 = vpop.f32.mrb[0].mxu0 }
 0x12e   :  { %v173_v21 = vpop.f32.mrb[1].mxu0  ;;  %v172_v22 = vadd.f32 %v171_v20, %v98_v19 }
 0x12f   :  { %v174_v1 = vadd.f32 %v173_v21, %v102_v18 }
 0x131   :  { %v176_v23 = vmax.f32 %v174_v1, 0.0 }
 0x133   :  { %v177_v24 = vmul.f32 %v176_v23, %v172_v22 }
 0x135   :  { %339 = vmatmul.mubr.f32.vlgmr.msra.gmra.mrb[0].mxu1 %v177_v24 }
 0x208   :  { %v267_v25 = vpop.f32.mrb[0].mxu1 }
 0x209   :  { %v268_v26 = vadd.f32 %v288_v0, %v267_v25  ;;  %v340_v27 = vpop.f32.mrb[1].mxu1 }
 0x20b   :  { %271 = vst [vmem:[#allocation8] sm:$0xff] %v268_v26 }
 0x20c   :  { %485 = shalt.err (!%p482_p0)
}
 0x20d   :  { %s486_s13 = scalar_lea.hbm %s612_s5, 128 }
 0x20e   :  { %p487_p1 = scmp.ne.s32.totalorder %s612_s5, %s486_s13  ;;  %p490_p2 = scmp.lt.u32.totalorder %s486_s13, %s612_s5 }
 0x210   :  { %p492_p3 = pnand %p490_p2, %p487_p1 }
 0x212   :  { %495 = shalt.err (!%p492_p3)
}
 0x213   :  { %281 = dma.vmem_to_hbm [thread:$0]  %s279_s10, 128, %s612_s5, [#allocation4]  }
 0x214   :  { %500 = dma.done.wait [#allocation4], 128  }
 0x215   :  { %501 = vsyncadd [#allocation4], 4294967168 }
 0x216   :  { %285 = vsyncpa [#allocation3], 1 }
 0x217   :  { %286 = vsyncpa [#allocation6], 1 }
 0x218   :  { %287 = vsyncpa [#allocation4], 1 }

</bundles_post_ra>
